<compile_context>
chip_gen: v7x
topology: tpu7x:2x2x1
jax: 0.10.0
libtpu: 0.0.40
codegen_flags: <defaults>
</compile_context>

<pallas_src>
import functools

import jax
import jax.numpy as jnp
from jax.experimental import pallas as pl
from jax.experimental.pallas import tpu as pltpu


def _round_up(x, m):
    return (x + m - 1) // m * m


ROW_TILE_MAX = 4096   # per-step rows; ~8-10 MiB VMEM double-buffered incl. 128-lane padding
H_PAD = 8             # MLP_Res hidden width padded 3 -> 8 (zero cols/rows, no effect)


# ---------------------------------------------------------------------------
# Fused kernel: the whole upsample_points math collapses to 1-2 MXU dots.
# ---------------------------------------------------------------------------
def _fused_upsample_kernel(x_ref, w1p_ref, b1_ref, wA_ref, wH_ref, bA_ref,
                           o_ref, *, apply_mlp):
    """(T, Kp) packed [feat | xyz | 0] rows -> (T, factor*out_dim) points."""
    x = x_ref[...]                                              # (T, Kp)
    out = jnp.dot(x, wA_ref[...], preferred_element_type=jnp.float32)
    if apply_mlp:
        # Nonlinear half of MLP_Res: h = relu(xyz @ W1 + b1), realized as a
        # dot against a zero-padded (Kp, H_PAD) weight so no lane slicing of
        # the packed slab is needed.  Its linear continuation (conv_2) and the
        # conv_shortcut are already folded into w_H / w_A / b_A.
        h = jnp.maximum(
            jnp.dot(x, w1p_ref[...], preferred_element_type=jnp.float32)
            + b1_ref[...], 0.0)                                  # (T, H_PAD)
        out = out + jnp.dot(h, wH_ref[...], preferred_element_type=jnp.float32)
    o_ref[...] = (out + bA_ref[...]).astype(o_ref.dtype)


# ---------------------------------------------------------------------------
# Parameter init (deterministic, mirrors the nn.Module shapes)
# ---------------------------------------------------------------------------
def init_params(key, feature_dim, points_out_dim):
    """feature_dim = query_feature_dim + feature_mapper out_dim + in_fea_dim."""
    ks = jax.random.split(key, 4)

    def conv1x1(k, cin, cout):
        kw, kb = jax.random.split(k)
        # weight stored as (C_in, C_out) so channels-last x right-multiplies
        w = jax.random.normal(kw, (cin, cout), jnp.float32) / jnp.sqrt(cin)
        b = jax.random.normal(kb, (cout,), jnp.float32) * 0.01
        return w, b

    params = {}
    # MLP_Res(in_dim=3, hidden_dim=3, out_dim=3)
    params["mlp_w1"], params["mlp_b1"] = conv1x1(ks[0], 3, 3)
    params["mlp_w2"], params["mlp_b2"] = conv1x1(ks[1], 3, 3)
    params["mlp_ws"], params["mlp_bs"] = conv1x1(ks[2], 3, 3)
    # fc_layer: Conv1d(feature_dim + 3, points_out_dim, 1); stored split so the
    # kernel never concatenates activations.
    fin = feature_dim + 3
    w_full, b_fc = conv1x1(ks[3], fin, points_out_dim)
    params["fc_w_feat"] = w_full[:feature_dim]                 # (F_feat, Fout)
    params["fc_w_xyz"] = w_full[feature_dim:]                  # (3, Fout)
    params["fc_b"] = b_fc.reshape(1, points_out_dim)           # (1, Fout)
    return params


# ---------------------------------------------------------------------------
# Constant-fold the epilogue + MLP_Res linear path into the kernel weights.
# Done once at parameter-preparation time (tiny matrices) — not per forward.
# ---------------------------------------------------------------------------
def fold_params(params, *, feature_dim, out_dim, factor, scale, apply_mlp,
                feat_dtype):
    Fout = out_dim * factor
    Kp = _round_up(feature_dim + 3, 8)

    # Tile[d, f*out_dim + d] = 1 reproduces the coarse-point tiling of
    # point_upsample;  W_xyz' = Tile + scale*W_xyz absorbs the scale & add.
    tile_m = jnp.tile(jnp.eye(out_dim, dtype=jnp.float32), (1, factor))  # (3, Fout)
    wxyz_f = tile_m + scale * params["fc_w_xyz"]                         # (3, Fout)

    w_A = jnp.zeros((Kp, Fout), jnp.float32)
    w_A = w_A.at[:feature_dim].set(scale * params["fc_w_feat"])
    w1p = jnp.zeros((Kp, H_PAD), jnp.float32)
    b1p = jnp.zeros((1, H_PAD), jnp.float32)
    w_H = jnp.zeros((H_PAD, Fout), jnp.float32)

    if apply_mlp:
        # xn = relu(xyz@W1+b1)@W2 + xyz@Ws + (b2+bs);  out = feat@Wf' + xn@Wxyz' + b'
        w_A = w_A.at[feature_dim:feature_dim + 3].set(params["mlp_ws"] @ wxyz_f)
        w1p = w1p.at[feature_dim:feature_dim + 3, :3].set(params["mlp_w1"])
        b1p = b1p.at[0, :3].set(params["mlp_b1"])
        w_H = w_H.at[:3].set(params["mlp_w2"] @ wxyz_f)
        b_A = (scale * params["fc_b"]
               + (params["mlp_b2"] + params["mlp_bs"]).reshape(1, 3) @ wxyz_f)
    else:
        w_A = w_A.at[feature_dim:feature_dim + 3].set(wxyz_f)
        b_A = scale * params["fc_b"]

    return dict(w_A=w_A.astype(feat_dtype), w1p=w1p.astype(feat_dtype),
                b1p=b1p, w_H=w_H, b_A=b_A, Kp=Kp)


# ---------------------------------------------------------------------------
# Wrapper: pack inputs, tile rows, call the kernel.
# ---------------------------------------------------------------------------
def fused_upsample(final_feature, new_xyz, params, *, out_dim,
                   point_upsample_factor, output_scale_factor, apply_mlp,
                   feat_dtype=jnp.bfloat16):
    """(B, N, F_feat) + (B, N, 3) -> (B*N, out_dim*factor)."""
    B, N, _ = new_xyz.shape
    F_feat = final_feature.shape[-1]
    Fout = out_dim * point_upsample_factor

    folded = fold_params(params, feature_dim=F_feat, out_dim=out_dim,
                         factor=point_upsample_factor, scale=output_scale_factor,
                         apply_mlp=apply_mlp, feat_dtype=feat_dtype)
    Kp = folded["Kp"]

    # Single packed activation slab: feat | xyz | zero-pad (one DMA stream,
    # aligned K for the MXU, optional bf16 on the HBM->VMEM path).
    R = B * N
    packed = jnp.concatenate(
        [final_feature.reshape(R, F_feat),
         new_xyz.reshape(R, 3),
         jnp.zeros((R, Kp - F_feat - 3), final_feature.dtype)],
        axis=1).astype(feat_dtype)

    # Row tiling over the flattened B*N axis: one sublane-aligned block at
    # small sizes; ROW_TILE_MAX-row "parallel" tiles at realistic point counts.
    if R <= ROW_TILE_MAX:
        row_tile = _round_up(R, 8)
    else:
        row_tile = ROW_TILE_MAX
    R_pad = _round_up(R, row_tile)
    if R_pad != R:
        packed = jnp.pad(packed, ((0, R_pad - R), (0, 0)))

    kernel = functools.partial(_fused_upsample_kernel, apply_mlp=apply_mlp)
    const = lambda r: (0, 0)

    out = pl.pallas_call(
        kernel,
        out_shape=jax.ShapeDtypeStruct((R_pad, Fout), jnp.float32),
        grid=(R_pad // row_tile,),
        in_specs=[
            pl.BlockSpec((row_tile, Kp), lambda r: (r, 0)),   # packed activations
            pl.BlockSpec((Kp, H_PAD), const),                 # W1 (padded)
            pl.BlockSpec((1, H_PAD), const),                  # b1 (padded)
            pl.BlockSpec((Kp, Fout), const),                  # folded main weight
            pl.BlockSpec((H_PAD, Fout), const),               # folded hidden weight
            pl.BlockSpec((1, Fout), const),                   # folded bias
        ],
        out_specs=pl.BlockSpec((row_tile, Fout), lambda r: (r, 0)),
        compiler_params=pltpu.CompilerParams(
            dimension_semantics=("parallel",),
            vmem_limit_bytes=48 * 1024 * 1024),
    )(packed, folded["w1p"], folded["b1p"], folded["w_A"], folded["w_H"],
      folded["b_A"])

    if R_pad != R:
        out = out[:R]
    return out                                               # (R, Fout)


# ---------------------------------------------------------------------------
# Forward (upsample_points path of PointUpsampleDecoder, kl-regularization off)
# ---------------------------------------------------------------------------
def point_upsample_decoder_forward(final_feature, new_xyz, params, *, out_dim,
                                   point_upsample_factor, output_scale_factor,
                                   feat_dtype=jnp.bfloat16):
    B, N, c_xyz = new_xyz.shape
    assert c_xyz == 3 and out_dim == 3, "simple branch: out_dim == xyz dim == 3"

    # PyTorch: `if new_xyz.shape[1] in [4, 8, 16, 32]`.  At this call site
    # new_xyz is channels-last (B, N, 3) (it is cat'ed with final_feature on
    # dim=2 and transposed before every Conv1d), so shape[1] is the point
    # count N — gate on N.
    apply_mlp = N in (4, 8, 16, 32)

    up2d = fused_upsample(
        final_feature, new_xyz, params, out_dim=out_dim,
        point_upsample_factor=point_upsample_factor,
        output_scale_factor=output_scale_factor, apply_mlp=apply_mlp,
        feat_dtype=feat_dtype)

    # (B*N, factor*out_dim) -> (B, N*factor, out_dim): contiguous reshape left
    # to XLA (emitting 3-wide rows from the kernel would force 3/128-lane
    # masked stores).
    upsampled_points = up2d.reshape(B, N * point_upsample_factor, out_dim)
    return final_feature, upsampled_points


# ---------------------------------------------------------------------------
if __name__ == "__main__":
    # Synthetic config (apply_kl_regularization=False):
    #   query_feature_dim = 32, feature_mapper out_dim = 16, in_fea_dim = 0,
    #   out_dim = 3, point_upsample_factor = 4 (first_refine_coarse_points=False),
    #   output_scale_factor = 0.1, num_output_points = N * factor (no FPS).
    B, N = 2, 16
    QUERY_FEATURE_DIM, FM_OUT_DIM, IN_FEA_DIM = 32, 16, 0
    OUT_DIM, FACTOR, SCALE = 3, 4, 0.1
    feat_dim = QUERY_FEATURE_DIM + FM_OUT_DIM + IN_FEA_DIM      # 48
    points_out_dim = OUT_DIM * FACTOR                           # 12

    key = jax.random.PRNGKey(0)
    k_xyz, k_feat, k_param, k_xyz2, k_feat2 = jax.random.split(key, 5)

    new_xyz = jax.random.normal(k_xyz, (B, N, 3), jnp.float32)
    # TODO(synk): final_feature would come from PointNet2* + FeatureMapModule
    # (source not provided); synthesized here with matching shape.
    final_feature = jax.random.normal(k_feat, (B, N, feat_dim), jnp.float32)

    params = init_params(k_param, feat_dim, points_out_dim)

    # Pure-JAX reference of the original (unfolded) formulation.
    def ref_forward(feat, xyz):
        Bb, Nn, _ = xyz.shape
        if Nn in (4, 8, 16, 32):
            h = jnp.maximum(xyz @ params["mlp_w1"] + params["mlp_b1"], 0.0)
            xn = (h @ params["mlp_w2"] + params["mlp_b2"]
                  + xyz @ params["mlp_ws"] + params["mlp_bs"])
        else:
            xn = xyz
        fc_in = jnp.concatenate([feat, xn], axis=2)
        w_full = jnp.concatenate([params["fc_w_feat"], params["fc_w_xyz"]], axis=0)
        splitted = fc_in @ w_full + params["fc_b"]
        coarse = xn[:, :, :OUT_DIM]
        up = jnp.tile(coarse, (1, 1, FACTOR)) + SCALE * splitted
        return up.reshape(Bb, Nn * FACTOR, OUT_DIM)

    # 1) MLP_Res branch (N=16), f32 activations: tight check (validates folding).
    ff_out, up_f32 = point_upsample_decoder_forward(
        final_feature, new_xyz, params, out_dim=OUT_DIM,
        point_upsample_factor=FACTOR, output_scale_factor=SCALE,
        feat_dtype=jnp.float32)
    jax.block_until_ready(up_f32)
    ref = ref_forward(final_feature, new_xyz)
    assert ff_out.shape == (B, N, feat_dim)
    assert up_f32.shape == (B, N * FACTOR, OUT_DIM)
    err = float(jnp.max(jnp.abs(up_f32 - ref)))
    assert jnp.allclose(up_f32, ref, atol=1e-4, rtol=1e-4), err

    # 2) bf16 activation path (HBM-bandwidth optimization): loose check vs f32.
    _, up_bf16 = point_upsample_decoder_forward(
        final_feature, new_xyz, params, out_dim=OUT_DIM,
        point_upsample_factor=FACTOR, output_scale_factor=SCALE,
        feat_dtype=jnp.bfloat16)
    jax.block_until_ready(up_bf16)
    err_bf16 = float(jnp.max(jnp.abs(up_bf16 - ref)))
    assert err_bf16 < 1e-1, err_bf16

    # 3) no-MLP_Res branch (N=64), f32: tight check.
    N2 = 64
    new_xyz2 = jax.random.normal(k_xyz2, (B, N2, 3), jnp.float32)
    final_feature2 = jax.random.normal(k_feat2, (B, N2, feat_dim), jnp.float32)
    _, up2 = point_upsample_decoder_forward(
        final_feature2, new_xyz2, params, out_dim=OUT_DIM,
        point_upsample_factor=FACTOR, output_scale_factor=SCALE,
        feat_dtype=jnp.float32)
    jax.block_until_ready(up2)
    ref2 = ref_forward(final_feature2, new_xyz2)
    err2 = float(jnp.max(jnp.abs(up2 - ref2)))
    assert jnp.allclose(up2, ref2, atol=1e-4, rtol=1e-4), err2

    print("KERNEL_OK")
</pallas_src>

<mosaic_0001>
module attributes {stable_mosaic.version = 11 : i64} {
  func.func @_fused_upsample_kernel(%arg0: i32, %arg1: memref<32x56xf32, #tpu.memory_space<vmem>>, %arg2: memref<56x8xf32, #tpu.memory_space<vmem>>, %arg3: memref<1x8xf32, #tpu.memory_space<vmem>>, %arg4: memref<56x12xf32, #tpu.memory_space<vmem>>, %arg5: memref<8x12xf32, #tpu.memory_space<vmem>>, %arg6: memref<1x12xf32, #tpu.memory_space<vmem>>, %arg7: memref<32x12xf32, #tpu.memory_space<vmem>>) attributes {dimension_semantics = [#tpu.dimension_semantics<parallel>], iteration_bounds = array<i64: 1>, scalar_prefetch = 0 : i64, scratch_operands = 0 : i64, tpu.core_type = #tpu.core_type<tc>, window_params = [{transform_indices = @transform_0, window_bounds = array<i64: 32, 56>}, {pipeline_mode = #tpu.pipeline_mode<synchronous>, transform_indices = @transform_1, window_bounds = array<i64: 56, 8>}, {pipeline_mode = #tpu.pipeline_mode<synchronous>, transform_indices = @transform_2, window_bounds = array<i64: 1, 8>}, {pipeline_mode = #tpu.pipeline_mode<synchronous>, transform_indices = @transform_3, window_bounds = array<i64: 56, 12>}, {pipeline_mode = #tpu.pipeline_mode<synchronous>, transform_indices = @transform_4, window_bounds = array<i64: 8, 12>}, {pipeline_mode = #tpu.pipeline_mode<synchronous>, transform_indices = @transform_5, window_bounds = array<i64: 1, 12>}, {transform_indices = @transform_6, window_bounds = array<i64: 32, 12>}]} {
    %c0 = arith.constant 0 : index
    %c0_0 = arith.constant 0 : index
    %0 = vector.load %arg1[%c0, %c0_0] : memref<32x56xf32, #tpu.memory_space<vmem>>, vector<32x56xf32>
    %c0_1 = arith.constant 0 : index
    %c0_2 = arith.constant 0 : index
    %1 = vector.load %arg4[%c0_1, %c0_2] : memref<56x12xf32, #tpu.memory_space<vmem>>, vector<56x12xf32>
    %cst = arith.constant dense<0.000000e+00> : vector<32x12xf32>
    %2 = tpu.matmul %0, %1, %cst {dimension_numbers = #tpu.dot_dimension_numbers<[1], [0], [0], [1], [0, 0, 1, 1], [], []>} : vector<32x56xf32>, vector<56x12xf32>, vector<32x12xf32> -> vector<32x12xf32>
    %c0_3 = arith.constant 0 : index
    %c0_4 = arith.constant 0 : index
    %3 = vector.load %arg2[%c0_3, %c0_4] : memref<56x8xf32, #tpu.memory_space<vmem>>, vector<56x8xf32>
    %cst_5 = arith.constant dense<0.000000e+00> : vector<32x8xf32>
    %4 = tpu.matmul %0, %3, %cst_5 {dimension_numbers = #tpu.dot_dimension_numbers<[1], [0], [0], [1], [0, 0, 1, 1], [], []>} : vector<32x56xf32>, vector<56x8xf32>, vector<32x8xf32> -> vector<32x8xf32>
    %c0_6 = arith.constant 0 : index
    %c0_7 = arith.constant 0 : index
    %5 = vector.load %arg3[%c0_6, %c0_7] : memref<1x8xf32, #tpu.memory_space<vmem>>, vector<1x8xf32>
    %6 = vector.broadcast %5 : vector<1x8xf32> to vector<32x8xf32>
    %7 = arith.addf %4, %6 : vector<32x8xf32>
    %cst_8 = arith.constant 0.000000e+00 : f32
    %8 = vector.broadcast %cst_8 : f32 to vector<32x8xf32>
    %9 = arith.maximumf %7, %8 : vector<32x8xf32>
    %c0_9 = arith.constant 0 : index
    %c0_10 = arith.constant 0 : index
    %10 = vector.load %arg5[%c0_9, %c0_10] : memref<8x12xf32, #tpu.memory_space<vmem>>, vector<8x12xf32>
    %cst_11 = arith.constant dense<0.000000e+00> : vector<32x12xf32>
    %11 = tpu.matmul %9, %10, %cst_11 {dimension_numbers = #tpu.dot_dimension_numbers<[1], [0], [0], [1], [0, 0, 1, 1], [], []>} : vector<32x8xf32>, vector<8x12xf32>, vector<32x12xf32> -> vector<32x12xf32>
    %12 = arith.addf %2, %11 : vector<32x12xf32>
    %c0_12 = arith.constant 0 : index
    %c0_13 = arith.constant 0 : index
    %13 = vector.load %arg6[%c0_12, %c0_13] : memref<1x12xf32, #tpu.memory_space<vmem>>, vector<1x12xf32>
    %14 = vector.broadcast %13 : vector<1x12xf32> to vector<32x12xf32>
    %15 = arith.addf %12, %14 : vector<32x12xf32>
    %c0_14 = arith.constant 0 : index
    %c0_15 = arith.constant 0 : index
    %16 = vector.load %arg7[%c0_14, %c0_15] : memref<32x12xf32, #tpu.memory_space<vmem>>, vector<32x12xf32>
    tpu.vector_store %arg7[%c0_14, %c0_15], %15 {strides = array<i32>} : memref<32x12xf32, #tpu.memory_space<vmem>>, vector<32x12xf32>,
    return
  }
  func.func @transform_0(%arg0: i32) -> (i32, i32) {
    %c0_i32 = arith.constant 0 : i32
    %c0_i32_0 = arith.constant 0 : i32
    return %arg0, %c0_i32 : i32, i32
  }
  func.func @transform_1(%arg0: i32) -> (i32, i32) {
    %c0_i32 = arith.constant 0 : i32
    %c0_i32_0 = arith.constant 0 : i32
    %c0_i32_1 = arith.constant 0 : i32
    return %c0_i32, %c0_i32_0 : i32, i32
  }
  func.func @transform_2(%arg0: i32) -> (i32, i32) {
    %c0_i32 = arith.constant 0 : i32
    %c0_i32_0 = arith.constant 0 : i32
    %c0_i32_1 = arith.constant 0 : i32
    return %c0_i32, %c0_i32_0 : i32, i32
  }
  func.func @transform_3(%arg0: i32) -> (i32, i32) {
    %c0_i32 = arith.constant 0 : i32
    %c0_i32_0 = arith.constant 0 : i32
    %c0_i32_1 = arith.constant 0 : i32
    return %c0_i32, %c0_i32_0 : i32, i32
  }
  func.func @transform_4(%arg0: i32) -> (i32, i32) {
    %c0_i32 = arith.constant 0 : i32
    %c0_i32_0 = arith.constant 0 : i32
    %c0_i32_1 = arith.constant 0 : i32
    return %c0_i32, %c0_i32_0 : i32, i32
  }
  func.func @transform_5(%arg0: i32) -> (i32, i32) {
    %c0_i32 = arith.constant 0 : i32
    %c0_i32_0 = arith.constant 0 : i32
    %c0_i32_1 = arith.constant 0 : i32
    return %c0_i32, %c0_i32_0 : i32, i32
  }
  func.func @transform_6(%arg0: i32) -> (i32, i32) {
    %c0_i32 = arith.constant 0 : i32
    %c0_i32_0 = arith.constant 0 : i32
    return %arg0, %c0_i32 : i32, i32
  }
}

</mosaic_0001>

<bundles_post_ra>
// kernel: tpu_custom_call.1
= control target key start
LH: loop header
LB: loop body
LE: loop exit
PB: predicated region body
PF: predicated region fallthrough
CT: control target
= control target key end

     0   :  { %vm48_vm0 = vcmask 457728   ;;  %vm151_vm1 = vcmask 64512   ;;  %vm345_vm2 = vcmask 97280   ;;  %s593_s1 = inlined_call_operand.vmem [shape: f32[56,8], index: 1, kind: input, shape index: {}]   ;;  %s594_s0 = inlined_call_operand.vmem [shape: f32[32,56], index: 0, kind: input, shape index: {}]   ;;  %s595_s4 = inlined_call_operand.vmem [shape: f32[8,12], index: 4, kind: input, shape index: {}]   ;;  %s596_s3 = inlined_call_operand.vmem [shape: f32[56,12], index: 3, kind: input, shape index: {}]   ;;  %s597_s2 = inlined_call_operand.vmem [shape: f32[1,8], index: 2, kind: input, shape index: {}]   ;;  %s598_s5 = inlined_call_operand.vmem [shape: f32[1,12], index: 5, kind: input, shape index: {}]   ;;  %s599_s6 = inlined_call_operand.vmem [shape: f32[32,12], index: 6, kind: output, shape index: {}]  }
   0x1   :  { %v34_v0 = vld [vmem:[%s593_s1] sm:$0xff]  ;;  %v35_v1 = vld [vmem:[%s593_s1 + $0x8] sm:$0xff]  ;;  %v36_v2 = vld [vmem:[%s593_s1 + $0x10] sm:$0xff] }
   0x2   :  { %v443_v3 = vpack.c.bf16 %v35_v1, %v34_v0  ;;  %v37_v4 = vld [vmem:[%s593_s1 + $0x18] sm:$0xff]  ;;  %v38_v6 = vld [vmem:[%s593_s1 + $0x20] sm:$0xff]  ;;  %v39_v7 = vld [vmem:[%s593_s1 + $0x28] sm:$0xff] }
   0x3   :  { %v447_v5 = vpack.c.bf16 %v37_v4, %v36_v2  ;;  %v23_v8 = vld [vmem:[%s594_s0] sm:$0xff]  ;;  %v451_v9 = vpack.c.bf16 %v39_v7, %v38_v6  ;;  %v40_v10 = vld [vmem:[%s593_s1 + $0x30] sm:$0xff]  ;;  %v24_v11 = vld [vmem:[%s594_s0 + $0x8] sm:$0xff] }
   0x4   :  { %444 = vmatprep.subr.bf16.mxu0 %v443_v3  ;;  %409 = vmatprep.mubr.msk.f32.mxu0 %vm48_vm0, %v23_v8  ;;  %v25_v12 = vld [vmem:[%s594_s0 + $0x10] sm:$0xff]  ;;  %v26_v13 = vld [vmem:[%s594_s0 + $0x18] sm:$0xff]  ;;  %v150_v14 = vld [vmem:[%s595_s4] sm:$0xff] }
   0x5   :  { %446 = vmatpush3.bf16.msra.mxu0 %v443_v3  ;;  %v27_v15 = vld [vmem:[%s596_s3] sm:$0xff]  ;;  %v28_v16 = vld [vmem:[%s596_s3 + $0x8] sm:$0xff]  ;;  %415 = vmatprep.subr.mxu1 %v150_v14  ;;  %v29_v23 = vld [vmem:[%s596_s3 + $0x10] sm:$0xff] }
   0x6   :  { %448 = vmatprep.subr.bf16.mxu0 %v447_v5  ;;  %v455_v17 = vpack.c.bf16 %v28_v16, %v27_v15  ;;  %416 = vmatpush3.msra.mxu1 %v150_v14  ;;  %v354_v18 = vld [vmem:[%s597_s2] ss:$0 sm:$0xff]  ;;  %v30_v24 = vld [vmem:[%s596_s3 + $0x18] sm:$0xff]  ;;  %v32_v33 = vld [vmem:[%s596_s3 + $0x28] sm:$0xff] }
   0x7   :  { %v459_v30 = vpack.c.bf16 %v30_v24, %v29_v23  ;;  %v31_v32 = vld [vmem:[%s596_s3 + $0x20] sm:$0xff]  ;;  %v33_v37 = vld [vmem:[%s596_s3 + $0x30] sm:$0xff] }
   0x8   :  { %456 = vmatprep.subr.bf16.mxu1 %v455_v17  ;;  %v463_v36 = vpack.c.bf16 %v32_v33, %v31_v32  ;;  %v367_v38 = vld [vmem:[%s598_s5] ss:$0 sm:$0xff] }
   0x9   :  { %450 = vmatpush3.bf16.msra.mxu0 %v447_v5 }
   0xa   :  { %452 = vmatprep.subr.bf16.mxu0 %v451_v9 }
   0xd   :  { %454 = vmatpush3.bf16.msra.mxu0 %v451_v9 }
   0xe   :  { %407 = vmatprep.subr.mxu0 %v40_v10 }
  0x11   :  { %408 = vmatpush3.msra.mxu0 %v40_v10 }
  0x12   :  { %410 = vmatmul.mubr.msk.f32.vlgmr.msra.gmra.mrb[0].mxu0 %vm48_vm0, %v24_v11 }
  0x13   :  { %412 = vmatprep.mubr.msk.f32.mxu0 %vm48_vm0, %v25_v12 }
  0x16   :  { %413 = vmatmul.mubr.msk.f32.gmra.mrb[2].mxu0 %vm48_vm0, %v26_v13 }
  0xe5   :  { %v411_v19 = vpop.f32.mrb[0].mxu0 }
  0xe6   :  { %v133_v20 = vadd.f32 %v411_v19, %v354_v18  ;;  %v127_v21 = vpop.f32.mrb[1].mxu0 }
  0xe7   :  { %v128_v22 = vadd.f32 %v354_v18, %v127_v21 }
  0xe8   :  { %v147_v27 = vmax.f32 %v133_v20, 0.0 }
  0xe9   :  { %v146_v25 = vmax.f32 %v128_v22, 0.0  ;;  %v414_v26 = vpop.f32.mrb[2].mxu0 }
  0xea   :  { %v143_v28 = vadd.f32 %v414_v26, %v354_v18  ;;  %v137_v29 = vpop.f32.mrb[3].mxu0 }
  0xeb   :  { %417 = vmatprep.mubr.msk.f32.mxu1 %vm151_vm1, %v146_v25  ;;  %v138_v31 = vadd.f32 %v354_v18, %v137_v29 }
  0xec   :  { %418 = vmatmul.mubr.msk.f32.vlgmr.msra.gmra.mrb[0].mxu1 %vm151_vm1, %v147_v27  ;;  %v149_v34 = vmax.f32 %v143_v28, 0.0 }
  0xed   :  { %458 = vmatpush3.bf16.msra.mxu1 %v455_v17  ;;  %v148_v35 = vmax.f32 %v138_v31, 0.0 }
  0xee   :  { %460 = vmatprep.subr.bf16.mxu1 %v459_v30 }
  0xef   :  { %420 = vmatprep.mubr.msk.f32.mxu1 %vm151_vm1, %v148_v35 }
  0xf0   :  { %421 = vmatmul.mubr.msk.f32.gmra.mrb[2].mxu1 %vm151_vm1, %v149_v34 }
  0xf1   :  { %462 = vmatpush3.bf16.msra.mxu1 %v459_v30  ;;  %437 = vmatprep.mubr.msk.f32.mxu1 %vm48_vm0, %v23_v8 }
  0xf2   :  { %464 = vmatprep.subr.bf16.mxu1 %v463_v36 }
  0xf5   :  { %466 = vmatpush3.bf16.msra.mxu1 %v463_v36 }
  0xf6   :  { %435 = vmatprep.subr.mxu1 %v33_v37 }
  0xf9   :  { %436 = vmatpush3.msra.mxu1 %v33_v37 }
  0xfa   :  { %438 = vmatmul.mubr.msk.f32.vlgmr.msra.gmra.mrb[0].mxu1 %vm48_vm0, %v24_v11 }
  0xfb   :  { %440 = vmatprep.mubr.msk.f32.mxu1 %vm48_vm0, %v25_v12 }
  0xfe   :  { %441 = vmatmul.mubr.msk.f32.gmra.mrb[2].mxu1 %vm48_vm0, %v26_v13 }
 0x1cd   :  { %v439_v39 = vpop.f32.mrb[0].mxu1 }
 0x1ce   :  { %v342_v40 = vadd.f32 %v439_v39, %v367_v38  ;;  %v315_v41 = vpop.f32.mrb[1].mxu1 }
 0x1cf   :  { %v341_v42 = vadd.f32 %v367_v38, %v315_v41 }
 0x1d0   :  { %347 = vst.msk [vmem:[%s599_s6 + $0x8] sm:$0xff] %vm345_vm2, %v342_v40 }
 0x1d1   :  { %346 = vst.msk [vmem:[%s599_s6] sm:$0xff] %vm345_vm2, %v341_v42  ;;  %v442_v43 = vpop.f32.mrb[2].mxu1 }
 0x1d2   :  { %v344_v44 = vadd.f32 %v442_v43, %v367_v38  ;;  %v325_v45 = vpop.f32.mrb[3].mxu1 }
 0x1d3   :  { %v343_v46 = vadd.f32 %v367_v38, %v325_v45 }
 0x1d4   :  { %349 = vst.msk [vmem:[%s599_s6 + $0x18] sm:$0xff] %vm345_vm2, %v344_v44 }
 0x1d5   :  { %348 = vst.msk [vmem:[%s599_s6 + $0x10] sm:$0xff] %vm345_vm2, %v343_v46 }

</bundles_post_ra>
